<compile_context>
chip_gen: v7x
topology: tpu7x:2x2x1
jax: 0.10.0
libtpu: 0.0.40
codegen_flags: <defaults>
</compile_context>

<pallas_src>
import functools

import jax
import jax.numpy as jnp
from jax.experimental import pallas as pl
from jax.experimental.pallas import tpu as pltpu


def _round_up(x, m):
    return (x + m - 1) // m * m


def _post_kernel(a1_ref, w1_ref, b1_ref, w2_ref, b2_ref, w3_ref, b3_ref, o_ref,
                 *, batch):
    """Fused post-net: conv1(k3,p1)+SiLU -> conv2(k3,p1,s2)+SiLU -> conv3(k1).

    a1_ref : (2*B*L2, K1p) bf16  conv1 im2col rows; first half = even time steps,
                                 second half = odd time steps (time-major,
                                 batch-minor ordering inside each half).
    w1_ref : (K1p, Cp)    bf16   conv1 weight, 3 taps stacked along K, zero-padded.
    w2_ref : (3*Cp, Cp)   bf16   conv2 weight, K blocks ordered [t-1, t, t+1] taps.
    w3_ref : (Cp, Cp)     bf16   1x1 conv weight.
    b*_ref : (1, Cp)      f32    biases (zero-padded channels).
    o_ref  : (B*L2, Cp)   f32    rows in (time-major, batch-minor) order.
    """
    n_out, cp = o_ref.shape  # B*L2, padded (lane-dense) channel count

    # --- conv1: single MXU matmul over fused K = 3*Cin (padded to 128 lanes) ---
    y1 = jnp.dot(a1_ref[...], w1_ref[...],
                 preferred_element_type=jnp.float32) + b1_ref[...]
    y1 = y1 * jax.nn.sigmoid(y1)                      # SiLU in f32 (VPU + EUP)
    y1 = y1.astype(jnp.bfloat16)                      # bf16 feed for next matmul

    even = y1[:n_out]                                 # y1 at time 2t
    odd = y1[n_out:]                                  # y1 at time 2t+1
    # y1 at time 2t-1: shift the odd stream down by one time step.  Rows are
    # time-major, so one time step == `batch` rows; the inserted zero rows are
    # exactly the left zero padding of the strided conv for every batch element.
    prev = jnp.concatenate(
        [jnp.zeros((batch, cp), jnp.bfloat16), odd[:n_out - batch]], axis=0)

    # --- conv2 (k=3, stride=2): computed only at the L/2 output positions as one
    #     matmul with fused contraction K = 3*Cp ---
    im2 = jnp.concatenate([prev, even, odd], axis=-1)  # (B*L2, 3*Cp)
    y2 = jnp.dot(im2, w2_ref[...],
                 preferred_element_type=jnp.float32) + b2_ref[...]
    y2 = y2 * jax.nn.sigmoid(y2)                       # SiLU in f32
    y2 = y2.astype(jnp.bfloat16)

    # --- conv3 (k=1) == dense projection ---
    y3 = jnp.dot(y2, w3_ref[...],
                 preferred_element_type=jnp.float32) + b3_ref[...]
    o_ref[...] = y3.astype(o_ref.dtype)


def post_conv_stack(hidden, params):
    """hidden: (B, T, Cin) channels-last -> (B, Cout, T//2) (PyTorch NCL output)."""
    B, L, cin = hidden.shape
    cout = params["w1"].shape[2]
    assert L % 2 == 0, "demo assumes even sequence length"
    L2 = (L + 2 - 3) // 2 + 1                          # PyTorch formula == L // 2
    n_out = B * L2

    cp = _round_up(cout, 128)                          # lane-dense channels
    k1 = 3 * cin
    k1p = _round_up(k1, 128)                           # lane-dense conv1 contraction

    f32, bf16 = jnp.float32, jnp.bfloat16

    # conv1 im2col built in XLA: zero-pad time, stack the 3 taps along channels,
    # then split into even / odd time steps (time-major, batch-minor row order) so
    # the kernel only ever slices aligned, contiguous row blocks.
    hp = jnp.pad(hidden.astype(f32), ((0, 0), (1, 1), (0, 0)))          # (B, L+2, Cin)
    im = jnp.concatenate([hp[:, 0:L], hp[:, 1:L + 1], hp[:, 2:L + 2]], axis=-1)
    im_e = jnp.transpose(im[:, 0::2], (1, 0, 2)).reshape(n_out, k1)     # time-major
    im_o = jnp.transpose(im[:, 1::2], (1, 0, 2)).reshape(n_out, k1)
    a1 = jnp.concatenate([im_e, im_o], axis=0)                          # (2*B*L2, 3Cin)
    a1 = jnp.pad(a1, ((0, 0), (0, k1p - k1))).astype(bf16)

    def pad2(w, rows, cols):
        return jnp.pad(w, ((0, rows - w.shape[0]), (0, cols - w.shape[1])))

    w1 = pad2(params["w1"].reshape(k1, cout), k1p, cp).astype(bf16)     # (K1p, Cp)
    w2 = jnp.concatenate([pad2(params["w2"][k], cp, cp) for k in range(3)],
                         axis=0).astype(bf16)                           # (3*Cp, Cp)
    w3 = pad2(params["w3"], cp, cp).astype(bf16)                        # (Cp, Cp)
    b1 = pad2(params["b1"], 1, cp).astype(f32)
    b2 = pad2(params["b2"], 1, cp).astype(f32)
    b3 = pad2(params["b3"], 1, cp).astype(f32)

    # TODO(synk): for real HuBERT sizes (hidden~1024, T in the thousands) tile the
    # row axis with a grid + 1-time-step halo and set vmem_limit_bytes (v7x 64 MiB).
    out = pl.pallas_call(
        functools.partial(_post_kernel, batch=B),
        out_shape=jax.ShapeDtypeStruct((n_out, cp), f32),
        grid_spec=pltpu.PrefetchScalarGridSpec(
            num_scalar_prefetch=0,
            grid=(1,),                       # whole batch folded into one step
            in_specs=[
                pl.BlockSpec((2 * n_out, k1p), lambda i: (0, 0)),
                pl.BlockSpec((k1p, cp), lambda i: (0, 0)),
                pl.BlockSpec((1, cp), lambda i: (0, 0)),
                pl.BlockSpec((3 * cp, cp), lambda i: (0, 0)),
                pl.BlockSpec((1, cp), lambda i: (0, 0)),
                pl.BlockSpec((cp, cp), lambda i: (0, 0)),
                pl.BlockSpec((1, cp), lambda i: (0, 0)),
            ],
            out_specs=pl.BlockSpec((n_out, cp), lambda i: (0, 0)),
        ),
        compiler_params=pltpu.CompilerParams(
            dimension_semantics=("arbitrary",)),
    )(a1, w1, b1, w2, b2, w3, b3)

    # Rows are (time-major, batch-minor); drop channel padding, back to NCL.
    out = out.reshape(L2, B, cp)[:, :, :cout]
    return jnp.transpose(out, (1, 2, 0))               # (B, Cout, L2)


def _backbone_stub(x, mask, params):
    """Deterministic stand-in for HubertModel(...).last_hidden_state -> (B, T, hidden)."""
    # TODO(synk): the pretrained HubertModel backbone (CNN feature extractor +
    # transformer) needs a checkpoint and is not reproducible in-script; it is
    # replaced by deterministic audio framing + a fixed linear projection.
    B, S = x.shape
    hop = params["frame_proj"].shape[0]
    T = S // hop
    frames = (x[:, :T * hop] * mask[:, :T * hop]).reshape(B, T, hop)
    return jnp.einsum("bth,hd->btd", frames, params["frame_proj"])


def hubert_encoder_forward(x, mask, params):
    """Mirrors HubertEncoder.forward.  x/mask: (B, 1, S) or (B, S); out: (B, out, T//2)."""
    if x.ndim == 3:
        assert x.shape[1] == 1 and mask.shape[1] == 1
        x = x[:, 0, :]
        mask = mask[:, 0, :]
    hidden = _backbone_stub(x, mask, params)           # last_hidden_state (B, T, hidden)
    # PyTorch transposes to NCL before the convs; the kernel consumes channels-last
    # im2col slabs directly and the wrapper emits NCL (B, Cout, T//2).
    return post_conv_stack(hidden, params)


def init_params(key, *, hop=32, hidden=32, output_size=64):
    ks = jax.random.split(key, 7)

    def u(k, shape, fan_in):
        bound = 1.0 / (fan_in ** 0.5)
        return jax.random.uniform(k, shape, jnp.float32, -bound, bound)

    return dict(
        frame_proj=u(ks[0], (hop, hidden), hop),
        w1=u(ks[1], (3, hidden, output_size), 3 * hidden),
        b1=u(ks[2], (1, output_size), 3 * hidden),
        w2=u(ks[3], (3, output_size, output_size), 3 * output_size),
        b2=u(ks[4], (1, output_size), 3 * output_size),
        w3=u(ks[5], (output_size, output_size), output_size),
        b3=u(ks[6], (1, output_size), output_size),
    )


def _post_ref(hidden, params):
    """Plain-JAX reference of the post stack (PyTorch NCL conv semantics)."""
    x = jnp.transpose(hidden, (0, 2, 1))               # (B, C, T) like torch

    def conv1d(x, w_kio, b, stride, pad):
        w = jnp.transpose(w_kio, (2, 1, 0))            # (Cout, Cin, K) torch layout
        y = jax.lax.conv_general_dilated(
            x, w, window_strides=(stride,), padding=[(pad, pad)],
            dimension_numbers=("NCH", "OIH", "NCH"))
        return y + b[0][None, :, None]

    y = conv1d(x, params["w1"], params["b1"], 1, 1)
    y = jax.nn.silu(y)
    y = conv1d(y, params["w2"], params["b2"], 2, 1)
    y = jax.nn.silu(y)
    y = conv1d(y, params["w3"][None, :, :], params["b3"], 1, 0)
    return y                                           # (B, out, T//2)


if __name__ == "__main__":
    key = jax.random.PRNGKey(0)
    kp, kx = jax.random.split(key)

    B, S, hop, hidden_dim, out_size = 2, 512, 32, 32, 64   # T = 16, T_out = 8
    params = init_params(kp, hop=hop, hidden=hidden_dim, output_size=out_size)

    x = jax.random.normal(kx, (B, 1, S), jnp.float32)
    mask = jnp.ones((B, 1, S), jnp.float32)

    y = hubert_encoder_forward(x, mask, params)
    y = jax.block_until_ready(y)
    assert y.shape == (B, out_size, (S // hop) // 2), y.shape

    # Sanity check the Pallas post stack against a plain-JAX f32 reference
    # (kernel uses bf16 matmul inputs with f32 accumulation -> loose tolerance).
    hidden_states = _backbone_stub(x[:, 0, :], mask[:, 0, :], params)
    y_ref = _post_ref(hidden_states, params)
    err = jnp.max(jnp.abs(y - y_ref))
    assert err < 2e-2, f"max abs diff too large: {err}"

    print("KERNEL_OK")
</pallas_src>

<mosaic_0001>
module attributes {stable_mosaic.version = 11 : i64} {
  func.func @_post_kernel(%arg0: i32, %arg1: memref<32x128xbf16, #tpu.memory_space<vmem>>, %arg2: memref<128x128xbf16, #tpu.memory_space<vmem>>, %arg3: memref<1x128xf32, #tpu.memory_space<vmem>>, %arg4: memref<384x128xbf16, #tpu.memory_space<vmem>>, %arg5: memref<1x128xf32, #tpu.memory_space<vmem>>, %arg6: memref<128x128xbf16, #tpu.memory_space<vmem>>, %arg7: memref<1x128xf32, #tpu.memory_space<vmem>>, %arg8: memref<16x128xf32, #tpu.memory_space<vmem>>) attributes {dimension_semantics = [#tpu.dimension_semantics<arbitrary>], iteration_bounds = array<i64: 1>, scalar_prefetch = 0 : i64, scratch_operands = 0 : i64, tpu.core_type = #tpu.core_type<tc>, window_params = [{pipeline_mode = #tpu.pipeline_mode<synchronous>, transform_indices = @transform_0, window_bounds = array<i64: 32, 128>}, {pipeline_mode = #tpu.pipeline_mode<synchronous>, transform_indices = @transform_1, window_bounds = array<i64: 128, 128>}, {pipeline_mode = #tpu.pipeline_mode<synchronous>, transform_indices = @transform_2, window_bounds = array<i64: 1, 128>}, {pipeline_mode = #tpu.pipeline_mode<synchronous>, transform_indices = @transform_3, window_bounds = array<i64: 384, 128>}, {pipeline_mode = #tpu.pipeline_mode<synchronous>, transform_indices = @transform_4, window_bounds = array<i64: 1, 128>}, {pipeline_mode = #tpu.pipeline_mode<synchronous>, transform_indices = @transform_5, window_bounds = array<i64: 128, 128>}, {pipeline_mode = #tpu.pipeline_mode<synchronous>, transform_indices = @transform_6, window_bounds = array<i64: 1, 128>}, {pipeline_mode = #tpu.pipeline_mode<synchronous>, transform_indices = @transform_7, window_bounds = array<i64: 16, 128>}]} {
    %c0 = arith.constant 0 : index
    %c0_0 = arith.constant 0 : index
    %0 = vector.load %arg1[%c0, %c0_0] : memref<32x128xbf16, #tpu.memory_space<vmem>>, vector<32x128xbf16>
    %c0_1 = arith.constant 0 : index
    %c0_2 = arith.constant 0 : index
    %1 = vector.load %arg2[%c0_1, %c0_2] : memref<128x128xbf16, #tpu.memory_space<vmem>>, vector<128x128xbf16>
    %cst = arith.constant dense<0.000000e+00> : vector<32x128xf32>
    %2 = tpu.matmul %0, %1, %cst {dimension_numbers = #tpu.dot_dimension_numbers<[1], [0], [0], [1], [0, 0, 1, 1], [], []>} : vector<32x128xbf16>, vector<128x128xbf16>, vector<32x128xf32> -> vector<32x128xf32>
    %c0_3 = arith.constant 0 : index
    %c0_4 = arith.constant 0 : index
    %3 = vector.load %arg3[%c0_3, %c0_4] : memref<1x128xf32, #tpu.memory_space<vmem>>, vector<1x128xf32>
    %4 = vector.broadcast %3 : vector<1x128xf32> to vector<32x128xf32>
    %5 = arith.addf %2, %4 : vector<32x128xf32>
    %6 = arith.negf %5 : vector<32x128xf32>
    %7 = math.exp %6 : vector<32x128xf32>
    %cst_5 = arith.constant 1.000000e+00 : f32
    %8 = vector.broadcast %cst_5 : f32 to vector<32x128xf32>
    %9 = arith.addf %8, %7 : vector<32x128xf32>
    %10 = arith.divf %8, %9 : vector<32x128xf32>
    %11 = arith.mulf %5, %10 : vector<32x128xf32>
    %12 = arith.truncf %11 : vector<32x128xf32> to vector<32x128xbf16>
    %13 = vector.extract_strided_slice %12 {offsets = [0, 0], sizes = [16, 128], strides = [1, 1]} : vector<32x128xbf16> to vector<16x128xbf16>
    %14 = vector.extract_strided_slice %12 {offsets = [16, 0], sizes = [16, 128], strides = [1, 1]} : vector<32x128xbf16> to vector<16x128xbf16>
    %cst_6 = arith.constant 0.000000e+00 : bf16
    %15 = vector.broadcast %cst_6 : bf16 to vector<2x128xbf16>
    %16 = vector.extract_strided_slice %14 {offsets = [0, 0], sizes = [14, 128], strides = [1, 1]} : vector<16x128xbf16> to vector<14x128xbf16>
    %17 = tpu.concatenate %15, %16 in 0 : vector<2x128xbf16>, vector<14x128xbf16> -> vector<16x128xbf16>
    %18 = tpu.concatenate %17, %13, %14 in 1 : vector<16x128xbf16>, vector<16x128xbf16>, vector<16x128xbf16> -> vector<16x384xbf16>
    %c0_7 = arith.constant 0 : index
    %c0_8 = arith.constant 0 : index
    %19 = vector.load %arg4[%c0_7, %c0_8] : memref<384x128xbf16, #tpu.memory_space<vmem>>, vector<384x128xbf16>
    %cst_9 = arith.constant dense<0.000000e+00> : vector<16x128xf32>
    %20 = tpu.matmul %18, %19, %cst_9 {dimension_numbers = #tpu.dot_dimension_numbers<[1], [0], [0], [1], [0, 0, 1, 1], [], []>} : vector<16x384xbf16>, vector<384x128xbf16>, vector<16x128xf32> -> vector<16x128xf32>
    %c0_10 = arith.constant 0 : index
    %c0_11 = arith.constant 0 : index
    %21 = vector.load %arg5[%c0_10, %c0_11] : memref<1x128xf32, #tpu.memory_space<vmem>>, vector<1x128xf32>
    %22 = vector.broadcast %21 : vector<1x128xf32> to vector<16x128xf32>
    %23 = arith.addf %20, %22 : vector<16x128xf32>
    %24 = arith.negf %23 : vector<16x128xf32>
    %25 = math.exp %24 : vector<16x128xf32>
    %cst_12 = arith.constant 1.000000e+00 : f32
    %26 = vector.broadcast %cst_12 : f32 to vector<16x128xf32>
    %27 = arith.addf %26, %25 : vector<16x128xf32>
    %28 = arith.divf %26, %27 : vector<16x128xf32>
    %29 = arith.mulf %23, %28 : vector<16x128xf32>
    %30 = arith.truncf %29 : vector<16x128xf32> to vector<16x128xbf16>
    %c0_13 = arith.constant 0 : index
    %c0_14 = arith.constant 0 : index
    %31 = vector.load %arg6[%c0_13, %c0_14] : memref<128x128xbf16, #tpu.memory_space<vmem>>, vector<128x128xbf16>
    %cst_15 = arith.constant dense<0.000000e+00> : vector<16x128xf32>
    %32 = tpu.matmul %30, %31, %cst_15 {dimension_numbers = #tpu.dot_dimension_numbers<[1], [0], [0], [1], [0, 0, 1, 1], [], []>} : vector<16x128xbf16>, vector<128x128xbf16>, vector<16x128xf32> -> vector<16x128xf32>
    %c0_16 = arith.constant 0 : index
    %c0_17 = arith.constant 0 : index
    %33 = vector.load %arg7[%c0_16, %c0_17] : memref<1x128xf32, #tpu.memory_space<vmem>>, vector<1x128xf32>
    %34 = vector.broadcast %33 : vector<1x128xf32> to vector<16x128xf32>
    %35 = arith.addf %32, %34 : vector<16x128xf32>
    %c0_18 = arith.constant 0 : index
    %c0_19 = arith.constant 0 : index
    %36 = vector.load %arg8[%c0_18, %c0_19] : memref<16x128xf32, #tpu.memory_space<vmem>>, vector<16x128xf32>
    tpu.vector_store %arg8[%c0_18, %c0_19], %35 {strides = array<i32>} : memref<16x128xf32, #tpu.memory_space<vmem>>, vector<16x128xf32>,
    return
  }
  func.func @transform_0(%arg0: i32) -> (i32, i32) {
    %c0_i32 = arith.constant 0 : i32
    %c0_i32_0 = arith.constant 0 : i32
    %c0_i32_1 = arith.constant 0 : i32
    return %c0_i32, %c0_i32_0 : i32, i32
  }
  func.func @transform_1(%arg0: i32) -> (i32, i32) {
    %c0_i32 = arith.constant 0 : i32
    %c0_i32_0 = arith.constant 0 : i32
    %c0_i32_1 = arith.constant 0 : i32
    return %c0_i32, %c0_i32_0 : i32, i32
  }
  func.func @transform_2(%arg0: i32) -> (i32, i32) {
    %c0_i32 = arith.constant 0 : i32
    %c0_i32_0 = arith.constant 0 : i32
    %c0_i32_1 = arith.constant 0 : i32
    return %c0_i32, %c0_i32_0 : i32, i32
  }
  func.func @transform_3(%arg0: i32) -> (i32, i32) {
    %c0_i32 = arith.constant 0 : i32
    %c0_i32_0 = arith.constant 0 : i32
    %c0_i32_1 = arith.constant 0 : i32
    return %c0_i32, %c0_i32_0 : i32, i32
  }
  func.func @transform_4(%arg0: i32) -> (i32, i32) {
    %c0_i32 = arith.constant 0 : i32
    %c0_i32_0 = arith.constant 0 : i32
    %c0_i32_1 = arith.constant 0 : i32
    return %c0_i32, %c0_i32_0 : i32, i32
  }
  func.func @transform_5(%arg0: i32) -> (i32, i32) {
    %c0_i32 = arith.constant 0 : i32
    %c0_i32_0 = arith.constant 0 : i32
    %c0_i32_1 = arith.constant 0 : i32
    return %c0_i32, %c0_i32_0 : i32, i32
  }
  func.func @transform_6(%arg0: i32) -> (i32, i32) {
    %c0_i32 = arith.constant 0 : i32
    %c0_i32_0 = arith.constant 0 : i32
    %c0_i32_1 = arith.constant 0 : i32
    return %c0_i32, %c0_i32_0 : i32, i32
  }
  func.func @transform_7(%arg0: i32) -> (i32, i32) {
    %c0_i32 = arith.constant 0 : i32
    %c0_i32_0 = arith.constant 0 : i32
    %c0_i32_1 = arith.constant 0 : i32
    return %c0_i32, %c0_i32_0 : i32, i32
  }
}

</mosaic_0001>

<bundles_post_ra>
// kernel: tpu_custom_call.1
= control target key start
LH: loop header
LB: loop body
LE: loop exit
PB: predicated region body
PF: predicated region fallthrough
CT: control target
= control target key end

     0   :  { %12 = vsyncpa [#allocation3], 0  ;;  %s1209_s0 = inlined_call_operand.hbm [shape: bf16[32,128], index: 0, kind: input, shape index: {}]   ;;  %s1210_s1 = inlined_call_operand.hbm [shape: bf16[128,128], index: 1, kind: input, shape index: {}]   ;;  %s1211_s2 = inlined_call_operand.vmem [shape: f32[1,128], index: 2, kind: input, shape index: {}]   ;;  %s1212_s3 = inlined_call_operand.hbm [shape: bf16[384,128], index: 3, kind: input, shape index: {}]   ;;  %s1213_s4 = inlined_call_operand.vmem [shape: f32[1,128], index: 4, kind: input, shape index: {}]   ;;  %s1214_s5 = inlined_call_operand.hbm [shape: bf16[128,128], index: 5, kind: input, shape index: {}]   ;;  %s1215_s6 = inlined_call_operand.vmem [shape: f32[1,128], index: 6, kind: input, shape index: {}]   ;;  %s1216_s7 = inlined_call_operand.hbm [shape: f32[16,128], index: 7, kind: output, shape index: {}]  }
   0x1   :  { %13 = vsyncpa [#allocation6], 0 }
   0x2   :  { %14 = vsyncpa [#allocation9], 0 }
   0x3   :  { %15 = vsyncpa [#allocation4], 0  ;;  %s1043_s24 = smov [#allocation5]   ;;  %s1044_s26 = smov [#allocation2]  }
   0x4   :  { %s33_s25 = sshll.u32 %s1043_s24, 4  ;;  %s21_s27 = sshll.u32 %s1044_s26, 4  ;;  %s34_s25 = int_to_ptr.vmem [resolvable:$true] %s33_s25  ;;  %s1094_s27 = int_to_ptr.vmem [resolvable:$true] %s21_s27 }
   0x5   :  { %s925_s30 = scalar_lea.hbm %s1210_s1, 1024 }
   0x6   :  { %p926_p0 = scmp.ne.s32.totalorder %s1210_s1, %s925_s30  ;;  %p929_p1 = scmp.lt.u32.totalorder %s925_s30, %s1210_s1 }
   0x8   :  { %p931_p2 = pnand %p929_p1, %p926_p0 }
   0xa   :  { %934 = shalt.err (!%p931_p2)
}
   0xb   :  { %s935_s12 = scalar_lea.vmem %s34_s25, 1024  ;;  %p940_p4 = scmp.lt.s32.totalorder %s34_s25, %s34_s25 }
   0xc   :  { %p936_p3 = scmp.ne.s32.totalorder %s34_s25, %s935_s12  ;;  %p941_p5 = scmp.lt.s32.totalorder %s935_s12, %s935_s12 }
   0xe   :  { %p942_p6 = por %p941_p5, %p940_p4 }
  0x10   :  { %p943_p7 = pnand %p942_p6, %p936_p3 }
  0x12   :  { %946 = shalt.err (!%p943_p7)
}
  0x13   :  { %s1045_s13 = smov 64   ;;  %s1046_s14 = smov 4  }
  0x14   :  { %39 = dma.hbm_to_vmem [thread:$0]  %s1210_s1, 1024, %s34_s25, [#allocation6], %s1045_s13, %s1045_s13, %s1046_s14  }
  0x15   :  { %s947_s19 = scalar_lea.hbm %s1209_s0, 256 }
  0x16   :  { %p948_p8 = scmp.ne.s32.totalorder %s1209_s0, %s947_s19  ;;  %p951_p9 = scmp.lt.u32.totalorder %s947_s19, %s1209_s0 }
  0x18   :  { %p953_p10 = pnand %p951_p9, %p948_p8 }
  0x1a   :  { %956 = shalt.err (!%p953_p10)
}
  0x1b   :  { %s957_s24 = scalar_lea.vmem %s1094_s27, 256  ;;  %p962_p12 = scmp.lt.s32.totalorder %s1094_s27, %s1094_s27 }
  0x1c   :  { %p958_p11 = scmp.ne.s32.totalorder %s1094_s27, %s957_s24  ;;  %p963_p13 = scmp.lt.s32.totalorder %s957_s24, %s957_s24 }
  0x1e   :  { %p964_p0 = por %p963_p13, %p962_p12 }
  0x20   :  { %p965_p1 = pnand %p964_p0, %p958_p11 }
  0x22   :  { %968 = shalt.err (!%p965_p1)
}
  0x23   :  { %27 = dma.hbm_to_vmem [thread:$0]  %s1209_s0, 256, %s1094_s27, [#allocation3], %s1045_s13, %s1045_s13, %s1046_s14  }
  0x24   :  { %s1047_s26 = smov [#allocation7]   ;;  %s1048_s29 = smov [#allocation8]  }
  0x25   :  { %s47_s28 = sshll.u32 %s1047_s26, 4  ;;  %s61_s30 = sshll.u32 %s1048_s29, 4  ;;  %s48_s28 = int_to_ptr.vmem [resolvable:$true] %s47_s28  ;;  %s1131_s30 = int_to_ptr.vmem [resolvable:$true] %s61_s30 }
  0x26   :  { %s969_s10 = scalar_lea.hbm %s1212_s3, 3072 }
  0x27   :  { %p970_p2 = scmp.ne.s32.totalorder %s1212_s3, %s969_s10  ;;  %p973_p3 = scmp.lt.u32.totalorder %s969_s10, %s1212_s3 }
  0x29   :  { %p975_p4 = pnand %p973_p3, %p970_p2 }
  0x2b   :  { %978 = shalt.err (!%p975_p4)
}
  0x2c   :  { %s979_s0 = scalar_lea.vmem %s48_s28, 3072  ;;  %p984_p6 = scmp.lt.s32.totalorder %s48_s28, %s48_s28 }
  0x2d   :  { %p980_p5 = scmp.ne.s32.totalorder %s48_s28, %s979_s0  ;;  %p985_p7 = scmp.lt.s32.totalorder %s979_s0, %s979_s0 }
  0x2f   :  { %p986_p8 = por %p985_p7, %p984_p6 }
  0x31   :  { %p987_p9 = pnand %p986_p8, %p980_p5 }
  0x33   :  { %990 = shalt.err (!%p987_p9)
}
  0x34   :  { %53 = dma.hbm_to_vmem [thread:$0]  %s1212_s3, 3072, %s48_s28, [#allocation6], %s1045_s13, %s1045_s13, %s1046_s14  }
  0x35   :  { %s991_s20 = scalar_lea.hbm %s1214_s5, 1024 }
  0x36   :  { %p992_p10 = scmp.ne.s32.totalorder %s1214_s5, %s991_s20  ;;  %p995_p11 = scmp.lt.u32.totalorder %s991_s20, %s1214_s5 }
  0x38   :  { %p997_p12 = pnand %p995_p11, %p992_p10 }
  0x3a   :  { %1000 = shalt.err (!%p997_p12)
}
  0x3b   :  { %s1001_s1 = scalar_lea.vmem %s1131_s30, 1024  ;;  %p1006_p0 = scmp.lt.s32.totalorder %s1131_s30, %s1131_s30 }
  0x3c   :  { %p1002_p13 = scmp.ne.s32.totalorder %s1131_s30, %s1001_s1  ;;  %p1007_p1 = scmp.lt.s32.totalorder %s1001_s1, %s1001_s1 }
  0x3e   :  { %p1008_p2 = por %p1007_p1, %p1006_p0 }
  0x40   :  { %p1009_p3 = pnand %p1008_p2, %p1002_p13 }
  0x42   :  { %1012 = shalt.err (!%p1009_p3)
}
  0x43   :  { %67 = dma.hbm_to_vmem [thread:$0]  %s1214_s5, 1024, %s1131_s30, [#allocation9], %s1045_s13, %s1045_s13, %s1046_s14  }
  0x44   :  { %1035 = dma.done.wait [#allocation3], 256  }
  0x45   :  { %1036 = vsyncadd [#allocation3], 4294967040 }
  0x46   :  { %1037 = dma.done.wait [#allocation6], 4096  }
  0x47   :  { %1038 = vsyncadd [#allocation6], 4294963200 }
  0x48   :  { %1039 = dma.done.wait [#allocation9], 1024  }
  0x49   :  { %1040 = vsyncadd [#allocation9], 4294966272  ;;  %v859_v0 = vld [vmem:[#allocation5] sm:$0xff]   ;;  %v860_v1 = vld [vmem:[#allocation5 + $0x8] sm:$0xff]   ;;  %v1049_v11 = vmov 0.0   ;;  %vm1050_vm0 = vmmov 0  }
  0x4a   :  { %788 = vmatprep.subr.bf16.mxu0 %v859_v0  ;;  %v861_v2 = vld [vmem:[#allocation5 + $0x10] sm:$0xff]   ;;  %v862_v3 = vld [vmem:[#allocation5 + $0x18] sm:$0xff]   ;;  %v863_v5 = vld [vmem:[#allocation5 + $0x20] sm:$0xff]   ;;  %vm251_vm1 = vcmask 1040384   ;;  %s1051_s28 = smov [#allocation10]  }
  0x4b   :  { %789 = vmatpush3.bf16.msra.mxu0 %v859_v0  ;;  %v867_v4 = vld [vmem:[#allocation2] sm:$0xff]   ;;  %v864_v6 = vld [vmem:[#allocation5 + $0x28] sm:$0xff]   ;;  %v866_v8 = vld [vmem:[#allocation5 + $0x38] sm:$0xff]   ;;  %s671_s29 = sshll.u32 %s1051_s28, 4  ;;  %s672_s29 = int_to_ptr.vmem [resolvable:$true] %s671_s29 }
  0x4c   :  { %790 = vmatprep.subr.bf16.mxu0 %v860_v1  ;;  %804 = vmatprep.mubr.bf16.mxu0 %v867_v4  ;;  %v865_v7 = vld [vmem:[#allocation5 + $0x30] sm:$0xff]   ;;  %v868_v9 = vld [vmem:[#allocation2 + $0x8] sm:$0xff]   ;;  %v869_v10 = vld [vmem:[#allocation7 + $0x80] sm:$0xff]   ;;  %s1013_s30 = scalar_lea.vmem %s672_s29, 256  ;;  %p1018_p5 = scmp.lt.s32.totalorder %s672_s29, %s672_s29 }
  0x4d   :  { %v870_v12 = vld [vmem:[#allocation7 + $0x40] sm:$0xff]   ;;  %v872_v14 = vld [vmem:[#allocation7 + $0x88] sm:$0xff]   ;;  %v875_v17 = vld [vmem:[#allocation7 + $0x90] sm:$0xff]   ;;  %p1014_p4 = scmp.ne.s32.totalorder %s672_s29, %s1013_s30  ;;  %p1019_p6 = scmp.lt.s32.totalorder %s1013_s30, %s1013_s30 }
  0x4e   :  { %v871_v13 = vld [vmem:[#allocation7] sm:$0xff]   ;;  %748 = vmatprep.subr.bf16.mxu1 %v870_v12  ;;  %v873_v15 = vld [vmem:[#allocation7 + $0x48] sm:$0xff]   ;;  %v876_v18 = vld [vmem:[#allocation7 + $0x50] sm:$0xff]  }
  0x4f   :  { %791 = vmatpush3.bf16.msra.mxu0 %v860_v1  ;;  %749 = vmatpush3.bf16.msra.mxu1 %v871_v13  ;;  %v874_v16 = vld [vmem:[#allocation7 + $0x8] sm:$0xff]   ;;  %v877_v19 = vld [vmem:[#allocation7 + $0x10] sm:$0xff]   ;;  %v878_v20 = vld [vmem:[#allocation7 + $0x98] sm:$0xff]   ;;  %p1020_p7 = por %p1019_p6, %p1018_p5 }
  0x50   :  { %792 = vmatprep.subr.bf16.mxu0 %v861_v2  ;;  %750 = vmatprep.subr.bf16.mxu1 %v873_v15  ;;  %v879_v21 = vld [vmem:[#allocation7 + $0x58] sm:$0xff]   ;;  %v881_v23 = vld [vmem:[#allocation7 + $0xa0] sm:$0xff]   ;;  %v884_v26 = vld [vmem:[#allocation7 + $0xa8] sm:$0xff]  }
  0x51   :  { %v880_v22 = vld [vmem:[#allocation7 + $0x18] sm:$0xff]   ;;  %v882_v24 = vld [vmem:[#allocation7 + $0x60] sm:$0xff]   ;;  %v885_v27 = vld [vmem:[#allocation7 + $0x68] sm:$0xff]   ;;  %p1021_p8 = pnand %p1020_p7, %p1014_p4 }
  0x52   :  { %v883_v25 = vld [vmem:[#allocation7 + $0x20] sm:$0xff]   ;;  %v886_v28 = vld [vmem:[#allocation7 + $0x28] sm:$0xff]   ;;  %v887_v29 = vld [vmem:[#allocation7 + $0xb0] sm:$0xff]  }
  0x53   :  { %793 = vmatpush3.bf16.msra.mxu0 %v861_v2  ;;  %751 = vmatpush3.bf16.msra.mxu1 %v874_v16  ;;  %v888_v30 = vld [vmem:[#allocation7 + $0x70] sm:$0xff]   ;;  %v890_v32 = vld [vmem:[#allocation7 + $0xb8] sm:$0xff]   ;;  %vm725_vm2 = vmneg %vm251_vm1 }
  0x54   :  { %794 = vmatprep.subr.bf16.mxu0 %v862_v3  ;;  %752 = vmatprep.subr.bf16.mxu1 %v876_v18  ;;  %v889_v31 = vld [vmem:[#allocation7 + $0x30] sm:$0xff]   ;;  %v891_v33 = vld [vmem:[#allocation7 + $0x78] sm:$0xff]   ;;  %v894_v4 = vld [vmem:[#allocation8 + $0x8] sm:$0xff]  }
  0x55   :  { %v892_v34 = vld [vmem:[#allocation7 + $0x38] sm:$0xff]   ;;  %v685_v35 = vld [vmem:[%s1211_s2] ss:$0 sm:$0xff] }
  0x56   :  { %v700_v16 = vld [vmem:[%s1213_s4] ss:$0 sm:$0xff] }
  0x57   :  { %795 = vmatpush3.bf16.msra.mxu0 %v862_v3  ;;  %753 = vmatpush3.bf16.msra.mxu1 %v877_v19  ;;  %v893_v3 = vld [vmem:[#allocation8] sm:$0xff]  }
  0x58   :  { %796 = vmatprep.subr.bf16.mxu0 %v863_v5  ;;  %754 = vmatprep.subr.bf16.mxu1 %v879_v21 }
  0x5b   :  { %797 = vmatpush3.bf16.msra.mxu0 %v863_v5  ;;  %755 = vmatpush3.bf16.msra.mxu1 %v880_v22  ;;  %v895_v5 = vld [vmem:[#allocation8 + $0x10] sm:$0xff]  }
  0x5c   :  { %798 = vmatprep.subr.bf16.mxu0 %v864_v6  ;;  %756 = vmatprep.subr.bf16.mxu1 %v882_v24 }
  0x5f   :  { %799 = vmatpush3.bf16.msra.mxu0 %v864_v6  ;;  %757 = vmatpush3.bf16.msra.mxu1 %v883_v25  ;;  %v896_v6 = vld [vmem:[#allocation8 + $0x18] sm:$0xff]  }
  0x60   :  { %800 = vmatprep.subr.bf16.mxu0 %v865_v7  ;;  %758 = vmatprep.subr.bf16.mxu1 %v885_v27 }
  0x63   :  { %801 = vmatpush3.bf16.msra.mxu0 %v865_v7  ;;  %759 = vmatpush3.bf16.msra.mxu1 %v886_v28  ;;  %v897_v7 = vld [vmem:[#allocation8 + $0x20] sm:$0xff]  }
  0x64   :  { %802 = vmatprep.subr.bf16.mxu0 %v866_v8  ;;  %760 = vmatprep.subr.bf16.mxu1 %v888_v30 }
  0x67   :  { %803 = vmatpush3.bf16.msra.mxu0 %v866_v8  ;;  %761 = vmatpush3.bf16.msra.mxu1 %v889_v31  ;;  %v898_v8 = vld [vmem:[#allocation8 + $0x28] sm:$0xff]  }
  0x68   :  { %808 = vmatprep.subr.bf16.mxu0 %v1049_v11  ;;  %762 = vmatprep.subr.bf16.mxu1 %v891_v33 }
  0x6a   :  { %805 = vmatmul.mubr.bf16.vlgmr.msra.gmra.mrb[0].mxu0 %v868_v9  ;;  %v899_v9 = vld [vmem:[#allocation8 + $0x30] sm:$0xff]  }
  0x6b   :  { %809 = vmatpush3.bf16.msra.mxu0 %v869_v10  ;;  %763 = vmatpush3.bf16.msra.mxu1 %v892_v34  ;;  %v900_v10 = vld [vmem:[#allocation8 + $0x38] sm:$0xff]  }
  0x6c   :  { %810 = vmatprep.subr.bf16.mxu0 %v1049_v11  ;;  %824 = vmatprep.mubr.msk.bf16.mxu0 %vm1050_vm0, %v1049_v11 }
  0x6d   :  { %828 = vmatprep.subr.bf16.mxu1 %v1049_v11 }
  0x6f   :  { %811 = vmatpush3.bf16.msra.mxu0 %v872_v14 }
  0x70   :  { %812 = vmatprep.subr.bf16.mxu0 %v1049_v11 }
  0x73   :  { %813 = vmatpush3.bf16.msra.mxu0 %v875_v17 }
  0x74   :  { %814 = vmatprep.subr.bf16.mxu0 %v1049_v11 }
  0x77   :  { %815 = vmatpush3.bf16.msra.mxu0 %v878_v20 }
  0x78   :  { %816 = vmatprep.subr.bf16.mxu0 %v1049_v11 }
  0x7b   :  { %817 = vmatpush3.bf16.msra.mxu0 %v881_v23 }
  0x7c   :  { %818 = vmatprep.subr.bf16.mxu0 %v1049_v11 }
  0x7f   :  { %819 = vmatpush3.bf16.msra.mxu0 %v884_v26 }
  0x80   :  { %820 = vmatprep.subr.bf16.mxu0 %v1049_v11 }
  0x83   :  { %821 = vmatpush3.bf16.msra.mxu0 %v887_v29 }
  0x84   :  { %822 = vmatprep.subr.bf16.mxu0 %v1049_v11 }
  0x87   :  { %823 = vmatpush3.bf16.msra.mxu0 %v890_v32 }
 0x13d   :  { %v806_v36 = vpop.f32.mrb[0].mxu0 }
 0x13e   :  { %v213_v37 = vadd.f32 %v806_v36, %v685_v35  ;;  %v204_v38 = vpop.f32.mrb[1].mxu0 }
 0x13f   :  { %v205_v39 = vadd.f32 %v685_v35, %v204_v38  ;;  %v807_v40 = vpop.f32.mrb[2].mxu0 }
 0x140   :  { %v698_v41 = vmul.f32 -1.442695, %v213_v37  ;;  %v216_v42 = vadd.f32 %v807_v40, %v685_v35  ;;  %v207_v43 = vpop.f32.mrb[3].mxu0 }
 0x141   :  { %v696_v44 = vmul.f32 -1.442695, %v205_v39  ;;  %v208_v45 = vadd.f32 %v685_v35, %v207_v43 }
 0x142   :  { %901 = vpow2.f32 %v698_v41  ;;  %v699_v46 = vmul.f32 -1.442695, %v216_v42 }
 0x143   :  { %903 = vpow2.f32 %v696_v44  ;;  %v697_v47 = vmul.f32 -1.442695, %v208_v45 }
 0x144   :  { %905 = vpow2.f32 %v699_v46 }
 0x145   :  { %907 = vpow2.f32 %v697_v47 }
 0x14c   :  { %v902_v48 = vpop.eup %901 }
 0x14d   :  { %v904_v49 = vpop.eup %903  ;;  %v233_v50 = vadd.f32 1.0, %v902_v48 }
 0x14e   :  { %v906_v51 = vpop.eup %905  ;;  %v231_v52 = vadd.f32 1.0, %v904_v49 }
 0x14f   :  { %v908_v53 = vpop.eup %907  ;;  %909 = vrcp.f32 %v233_v50  ;;  %v234_v54 = vadd.f32 1.0, %v906_v51 }
 0x150   :  { %911 = vrcp.f32 %v231_v52  ;;  %v232_v55 = vadd.f32 1.0, %v908_v53 }
 0x151   :  { %913 = vrcp.f32 %v234_v54 }
 0x152   :  { %915 = vrcp.f32 %v232_v55 }
 0x159   :  { %v910_v56 = vpop.eup %909 }
 0x15a   :  { %v912_v57 = vpop.eup %911  ;;  %v245_v60 = vmul.f32 %v910_v56, %v213_v37  ;;  %v729_v37 = vld [vmem:[%s1215_s6] ss:$0 sm:$0xff] }
 0x15b   :  { %v914_v58 = vpop.eup %913  ;;  %v243_v62 = vmul.f32 %v912_v57, %v205_v39 }
 0x15c   :  { %v916_v59 = vpop.eup %915  ;;  %v246_v61 = vmul.f32 %v914_v58, %v216_v42 }
 0x15d   :  { %v244_v63 = vmul.f32 %v916_v59, %v208_v45 }
 0x15e   :  { %v248_v0 = vpack.c.bf16 %v246_v61, %v245_v60 }
 0x15f   :  { %v247_v1 = vpack.c.bf16 %v244_v63, %v243_v62 }
 0x160   :  { %v250_v2 = vrot.slane %v248_v0, 7  ;;  %825 = vmatmul.mubr.bf16.vlgmr.msra.gmra.mrb[4].mxu0 %v248_v0 }
 0x161   :  { %487 = vmatprep.mubr.bf16.mxu1 %v247_v1 }
 0x162   :  { %726 = vmatmul.mubr.msk.bf16.vlgmr.msra.gmra.mrb[0].mxu1 %vm725_vm2, %v250_v2 }
 0x163   :  { %844 = vmatprep.mubr.msk.bf16.mxu1 %vm1050_vm0, %v1049_v11  ;;  %829 = vmatpush3.bf16.msra.mxu1 %v893_v3 }
 0x164   :  { %830 = vmatprep.subr.bf16.mxu1 %v1049_v11 }
 0x167   :  { %831 = vmatpush3.bf16.msra.mxu1 %v894_v4 }
 0x168   :  { %832 = vmatprep.subr.bf16.mxu1 %v1049_v11 }
 0x16b   :  { %833 = vmatpush3.bf16.msra.mxu1 %v895_v5 }
 0x16c   :  { %834 = vmatprep.subr.bf16.mxu1 %v1049_v11 }
 0x16f   :  { %835 = vmatpush3.bf16.msra.mxu1 %v896_v6 }
 0x170   :  { %836 = vmatprep.subr.bf16.mxu1 %v1049_v11 }
 0x173   :  { %837 = vmatpush3.bf16.msra.mxu1 %v897_v7 }
 0x174   :  { %838 = vmatprep.subr.bf16.mxu1 %v1049_v11 }
 0x177   :  { %839 = vmatpush3.bf16.msra.mxu1 %v898_v8 }
 0x178   :  { %840 = vmatprep.subr.bf16.mxu1 %v1049_v11 }
 0x17b   :  { %841 = vmatpush3.bf16.msra.mxu1 %v899_v9 }
 0x17c   :  { %842 = vmatprep.subr.bf16.mxu1 %v1049_v11 }
 0x17f   :  { %843 = vmatpush3.bf16.msra.mxu1 %v900_v10 }
 0x233   :  { %v530_v12 = vpop.f32.mrb[4].mxu0 }
 0x234   :  { %v826_v13 = vpop.f32.mrb[5].mxu0 }
 0x235   :  { %v764_v14 = vpop.f32.mrb[0].mxu1  ;;  %v533_v15 = vpop.f32.mrb[6].mxu0 }
 0x236   :  { %v765_v17 = vpop.f32.mrb[1].mxu1  ;;  %v827_v18 = vpop.f32.mrb[7].mxu0 }
 0x237   :  { %v766_v19 = vadd.f32 %v765_v17, %v764_v14  ;;  %v767_v20 = vpop.f32.mrb[2].mxu1 }
 0x238   :  { %v768_v21 = vpop.f32.mrb[3].mxu1 }
 0x239   :  { %v490_v22 = vadd.f32 %v766_v19, %v700_v16  ;;  %v769_v23 = vadd.f32 %v768_v21, %v767_v20 }
 0x23b   :  { %v531_v24 = vadd.f32 %v530_v12, %v490_v22  ;;  %v493_v25 = vadd.f32 %v769_v23, %v700_v16 }
 0x23d   :  { %v727_v11 = vmul.f32 -1.442695, %v531_v24  ;;  %v534_v26 = vadd.f32 %v533_v15, %v493_v25 }
 0x23f   :  { %917 = vpow2.f32 %v727_v11  ;;  %v728_v27 = vmul.f32 -1.442695, %v534_v26 }
 0x241   :  { %919 = vpow2.f32 %v728_v27 }
 0x249   :  { %v918_v28 = vpop.eup %917 }
 0x24a   :  { %v543_v29 = vadd.f32 1.0, %v918_v28 }
 0x24b   :  { %v920_v30 = vpop.eup %919 }
 0x24c   :  { %921 = vrcp.f32 %v543_v29  ;;  %v544_v31 = vadd.f32 1.0, %v920_v30 }
 0x24e   :  { %923 = vrcp.f32 %v544_v31 }
 0x256   :  { %v922_v32 = vpop.eup %921 }
 0x257   :  { %v549_v34 = vmul.f32 %v922_v32, %v531_v24 }
 0x258   :  { %v924_v33 = vpop.eup %923 }
 0x259   :  { %v550_v35 = vmul.f32 %v924_v33, %v534_v26 }
 0x25b   :  { %v551_v36 = vpack.c.bf16 %v550_v35, %v549_v34 }
 0x25d   :  { %845 = vmatmul.mubr.bf16.vlgmr.msra.gmra.mrb[4].mxu1 %v551_v36 }
 0x330   :  { %v657_v38 = vpop.f32.mrb[4].mxu1 }
 0x331   :  { %v658_v39 = vadd.f32 %v729_v37, %v657_v38  ;;  %v846_v40 = vpop.f32.mrb[5].mxu1 }
 0x332   :  { %v660_v41 = vpop.f32.mrb[6].mxu1 }
 0x333   :  { %664 = vst [vmem:[#allocation10] sm:$0xff] %v658_v39  ;;  %v661_v42 = vadd.f32 %v729_v37, %v660_v41  ;;  %v847_v43 = vpop.f32.mrb[7].mxu1 }
 0x335   :  { %665 = vst [vmem:[#allocation10 + $0x8] sm:$0xff] %v661_v42 }
 0x336   :  { %1024 = shalt.err (!%p1021_p8)
}
 0x337   :  { %s1025_s9 = scalar_lea.hbm %s1216_s7, 256 }
 0x338   :  { %p1026_p9 = scmp.ne.s32.totalorder %s1216_s7, %s1025_s9  ;;  %p1029_p10 = scmp.lt.u32.totalorder %s1025_s9, %s1216_s7 }
 0x33a   :  { %p1031_p11 = pnand %p1029_p10, %p1026_p9 }
 0x33c   :  { %1034 = shalt.err (!%p1031_p11)
}
 0x33d   :  { %s1052_s16 = smov 128   ;;  %s1053_s0 = smov 8  }
 0x33e   :  { %677 = dma.vmem_to_hbm [thread:$0]  %s672_s29, 256, %s1216_s7, [#allocation4], %s1052_s16, %s1052_s16, %s1053_s0  }
 0x33f   :  { %1041 = dma.done.wait [#allocation4], 256  }
 0x340   :  { %1042 = vsyncadd [#allocation4], 4294967040 }
 0x341   :  { %681 = vsyncpa [#allocation3], 1 }
 0x342   :  { %682 = vsyncpa [#allocation6], 1 }
 0x343   :  { %683 = vsyncpa [#allocation9], 1 }
 0x344   :  { %684 = vsyncpa [#allocation4], 1 }

</bundles_post_ra>
